<compile_context>
chip_gen: v6e
topology: v6e:2x2x1
jax: 0.10.0
libtpu: 0.0.40
codegen_flags: <defaults>
</compile_context>

<pallas_src>
import math

import jax
import jax.numpy as jnp
from jax.experimental import pallas as pl
from jax.experimental.pallas import tpu as pltpu

NEG_INF = -1e30  # finite "minus infinity": avoids inf-inf NaNs in the online LSE


def _round_up(x: int, m: int) -> int:
    return (x + m - 1) // m * m


def _vmem_capacity_bytes() -> int:
    """Physical VMEM per TensorCore; conservative 64 MiB if undetectable."""
    try:
        kind = jax.devices()[0].device_kind.lower()
    except Exception:
        kind = ""
    if "v7" in kind:
        return 64 * 2**20                      # 64 MiB per TensorCore on v7x
    if any(v in kind for v in ("v6", "v5", "v4")):
        return 128 * 2**20
    try:
        return int(pltpu.get_tpu_info().vmem_capacity_bytes)
    except Exception:
        return 64 * 2**20                      # conservative default


def _plan_tiles(N, V, D, itemsize, row_tile, vocab_tile):
    """Pick (TM, VT, vmem_limit, big_vmem) from the actual per-step footprint."""
    vmem_cap = _vmem_capacity_bytes()
    big = vmem_cap >= 100 * 2**20              # v4/v5e/v6e parts (128 MiB VMEM)
    # Scoped-VMEM cap: leave compiler headroom; never claim all of v7x's 64 MiB.
    cap = (96 * 2**20) if big else (56 * 2**20)

    if row_tile is not None:
        TM = _round_up(row_tile, 128)
    else:
        # TM is the single biggest lever: FLOPs per W byte ~ TM.
        TM = _round_up(min(2048 if big else 1024, _round_up(N, 128)), 128)
    if vocab_tile is not None:
        VT = _round_up(vocab_tile, 16)
    else:
        VT = _round_up(min(512, _round_up(V, 16)), 16)

    w_bufs = 3 if big else 2                   # budget for a Buffered(3) W stream

    def work(tm, vt):
        # Only the per-step working set lives in VMEM (W is streamed, not resident).
        return (2 * D * tm * itemsize          # double-buffered (D, TM) activations
                + w_bufs * vt * D * itemsize   # (VT, D) W tiles
                + w_bufs * vt * 128 * 4        # (VT, 1) f32 bias lane-pads to (VT,128)
                + 6 * 8 * tm * 4               # tgt/loss/m/l rows (sublane-pad to 8)
                + 3 * vt * tm * 4)             # f32 logits/exp temporaries headroom

    # Shrink until it fits; prefer keeping TM large (it amortizes the W stream).
    while work(TM, VT) > cap:
        if 2 * D * TM * itemsize > cap // 2 and TM > 128:
            TM = _round_up(TM // 2, 128)
        elif VT > 128:
            VT = _round_up(VT // 2, 16)
        elif TM > 128:
            TM = _round_up(TM // 2, 128)
        else:
            break

    vmem_limit = int(min(cap, max(32 * 2**20, int(1.25 * work(TM, VT)) + 8 * 2**20)))
    return TM, VT, vmem_limit, big


def _make_lm_kernel(n_vocab_out: int):
    inv_log_v = 1.0 / math.log(n_vocab_out)

    def kernel(xemb_ref, w_ref, b_ref, tgt_ref, loss_ref, m_ref, l_ref):
        j = pl.program_id(1)  # vocab (reduction) step — innermost grid axis

        @pl.when(j == 0)
        def _init():
            m_ref[...] = jnp.full_like(m_ref, NEG_INF)
            l_ref[...] = jnp.zeros_like(l_ref)

        # (VT, TM) logits tile on the MXU, f32 accumulation.  The bias add is one
        # f32 VALU pass; the (VT, 1) bias block lane-pads to (VT, 128) in VMEM
        # (accounted for in the budget).
        logits = jnp.dot(w_ref[...], xemb_ref[...],
                         preferred_element_type=jnp.float32) + b_ref[...]

        # Online log-sum-exp over the vocab (sublane) axis -> (1, TM) stats.
        m_prev = m_ref[...]
        m_new = jnp.maximum(m_prev, jnp.max(logits, axis=0, keepdims=True))
        alpha = jnp.exp(m_prev - m_new)
        l_ref[...] = alpha * l_ref[...] + jnp.sum(jnp.exp(logits - m_new),
                                                  axis=0, keepdims=True)
        m_ref[...] = m_new

        @pl.when(j == pl.num_programs(1) - 1)
        def _finalize():
            # Target logits were precomputed per token (outside the hot loop),
            # so the epilogue is just lse - t; lane-dense (1, TM) store.
            lse = m_ref[...] + jnp.log(l_ref[...])
            loss_ref[...] = (lse - tgt_ref[...]) * inv_log_v

    return kernel


def language_model_forward(xy, emb_table, w_out, b_out, *, mode="shift",
                           compute_dtype=jnp.bfloat16,
                           row_tile=None, vocab_tile=None):
    """Pallas implementation of LanguageModel.forward(xy)."""
    if mode != "shift":
        # mode='last' produces (B,) targets against per-token logits, which does
        # not typecheck in the reference module with this inner head either.
        raise NotImplementedError("only mode='shift' is supported")

    x_tok = xy[..., :-1]
    y_tok = xy[..., 1:]
    B, T = x_tok.shape
    N = B * T
    D = emb_table.shape[-1]
    V = w_out.shape[-1]
    itemsize = jnp.dtype(compute_dtype).itemsize

    TM, VT, vmem_limit, big_vmem = _plan_tiles(N, V, D, itemsize,
                                               row_tile, vocab_tile)
    N_pad = _round_up(N, TM)
    V_pad = _round_up(V, VT)

    # --- inner module, part 1: embedding lookup (JAX glue, transposed layout) ---
    # Pad the token ids first and gather from the pre-transposed (small) table:
    # no (D, N)-sized transpose or pad copy is materialized.
    x_ids = jnp.pad(x_tok.reshape(-1).astype(jnp.int32), (0, N_pad - N))
    y_ids = jnp.pad(y_tok.reshape(-1).astype(jnp.int32), (0, N_pad - N))

    emb_t = emb_table.astype(compute_dtype).T                         # (D, n_vocab)
    x_emb_t = jnp.take(emb_t, x_ids, axis=1)                          # (D, N_pad)

    w_c = w_out.astype(compute_dtype)                                 # (D, V)
    w_t = jnp.pad(w_c.T, ((0, V_pad - V), (0, 0)))                    # (V_pad, D)
    # Padded vocab rows get a huge negative bias so they never affect the LSE.
    b_t = jnp.pad(b_out.astype(jnp.float32).reshape(V, 1),
                  ((0, V_pad - V), (0, 0)), constant_values=NEG_INF)  # (V_pad, 1)

    # Target logit per token, computed ONCE outside the vocab loop (hoists the
    # per-step iota/compare/where/extra-reduce out of the kernel entirely).
    # (Out-of-range target ids follow jnp gather semantics here.)
    w_y = jnp.take(w_c, y_ids, axis=1)                                # (D, N_pad)
    tgt = jnp.einsum("dn,dn->n", x_emb_t, w_y,
                     precision=jax.lax.Precision.HIGHEST,
                     preferred_element_type=jnp.float32)
    tgt = (tgt + jnp.take(b_out.astype(jnp.float32), y_ids)).reshape(1, N_pad)

    grid = (N_pad // TM, V_pad // VT)   # rows parallel (megacore), vocab reduction last
    kernel = _make_lm_kernel(V)

    # Triple-buffer the W stream on large-VMEM parts when there are enough vocab
    # steps for it to matter (hides DMA jitter when compute-per-step ~= DMA).
    w_spec_kwargs = {}
    if big_vmem and grid[1] >= 3:
        w_spec_kwargs["pipeline_mode"] = pl.Buffered(3)
    w_spec = pl.BlockSpec((VT, D), lambda i, j: (j, 0), **w_spec_kwargs)

    # NOTE: with vocab innermost, W and bias are re-fetched every inner step, so
    # the full W is re-streamed once per row tile; keep bytes_accessed in sync.
    cost = pl.CostEstimate(
        flops=2 * N_pad * D * V_pad,
        transcendentals=N_pad * V_pad,
        bytes_accessed=int(D * N_pad * itemsize                       # activations
                           + grid[0] * (V_pad * D * itemsize          # W per row tile
                                        + V_pad * 4)                  # bias per row tile
                           + 2 * N_pad * 4),                          # targets + loss
    )

    loss = pl.pallas_call(
        kernel,
        out_shape=jax.ShapeDtypeStruct((1, N_pad), jnp.float32),
        grid_spec=pltpu.PrefetchScalarGridSpec(
            num_scalar_prefetch=0,
            grid=grid,
            in_specs=[
                pl.BlockSpec((D, TM), lambda i, j: (0, i)),   # activations (lane-dense)
                w_spec,                                       # W vocab tile
                pl.BlockSpec((VT, 1), lambda i, j: (j, 0)),   # bias vocab tile (f32)
                pl.BlockSpec((1, TM), lambda i, j: (0, i)),   # target logits (f32)
            ],
            out_specs=pl.BlockSpec((1, TM), lambda i, j: (0, i)),
            scratch_shapes=[pltpu.VMEM((1, TM), jnp.float32)] * 2,    # m, l
        ),
        compiler_params=pltpu.CompilerParams(
            dimension_semantics=("parallel", "arbitrary"),
            vmem_limit_bytes=vmem_limit,
        ),
        cost_estimate=cost,
    )(x_emb_t, w_t, b_t, tgt)

    return loss[0, :N].reshape(B, T)


def language_model_forward_ref(xy, emb_table, w_out, b_out, *,
                               compute_dtype=jnp.float32):
    """Pure-JAX reference matching the PyTorch semantics (mode='shift')."""
    n_vocab_out = w_out.shape[-1]
    x_tok, y_tok = xy[..., :-1], xy[..., 1:]
    x_emb = emb_table[x_tok].astype(compute_dtype)            # (B, T, D)
    logits = jnp.dot(x_emb, w_out.astype(compute_dtype),
                     preferred_element_type=jnp.float32)
    logits = logits + b_out.astype(jnp.float32)               # (B, T, V)
    logp = jax.nn.log_softmax(logits, axis=-1)
    nll = -jnp.take_along_axis(logp, y_tok[..., None], axis=-1)[..., 0]
    return nll / math.log(n_vocab_out)


if __name__ == "__main__":
    # Small deterministic setup.
    B, Tp1 = 2, 9            # xy sequence length 9 -> x, y of length 8
    D = 32                   # hidden size of the synthetic inner module
    N_VOCAB = 32             # n_vocab_out

    key = jax.random.PRNGKey(0)
    k_tok, k_emb, k_w, k_b = jax.random.split(key, 4)

    xy = jax.random.randint(k_tok, (B, Tp1), 0, N_VOCAB, dtype=jnp.int32)
    emb_table = jax.random.normal(k_emb, (N_VOCAB, D), dtype=jnp.float32) * 0.1
    w_out = jax.random.normal(k_w, (D, N_VOCAB), dtype=jnp.float32) * 0.1
    b_out = jax.random.normal(k_b, (N_VOCAB,), dtype=jnp.float32) * 0.01

    # 1) exact-semantics check with f32 MXU operands.
    loss_f32 = language_model_forward(xy, emb_table, w_out, b_out,
                                      compute_dtype=jnp.float32)
    loss_f32 = jax.block_until_ready(loss_f32)
    ref_f32 = language_model_forward_ref(xy, emb_table, w_out, b_out,
                                         compute_dtype=jnp.float32)
    assert loss_f32.shape == (B, Tp1 - 1)
    assert jnp.allclose(loss_f32, ref_f32, atol=1e-5, rtol=1e-5), (loss_f32, ref_f32)

    # 2) fast path: bf16 MXU operands (f32 accumulation + f32 softmax math),
    #    compared against a reference using the same operand precision.
    loss_bf16 = language_model_forward(xy, emb_table, w_out, b_out,
                                       compute_dtype=jnp.bfloat16)
    loss_bf16 = jax.block_until_ready(loss_bf16)
    ref_bf16 = language_model_forward_ref(xy, emb_table, w_out, b_out,
                                          compute_dtype=jnp.bfloat16)
    assert jnp.allclose(loss_bf16, ref_bf16, atol=2e-4, rtol=2e-4), (loss_bf16, ref_bf16)

    print("KERNEL_OK")
</pallas_src>

<mosaic_0001>
module attributes {stable_mosaic.version = 11 : i64} {
  func.func @kernel(%arg0: i32, %arg1: i32, %arg2: memref<32x128xf32, #tpu.memory_space<vmem>>, %arg3: memref<32x32xf32, #tpu.memory_space<vmem>>, %arg4: memref<32x1xf32, #tpu.memory_space<vmem>>, %arg5: memref<1x128xf32, #tpu.memory_space<vmem>>, %arg6: memref<1x128xf32, #tpu.memory_space<vmem>>, %arg7: memref<1x128xf32, #tpu.memory_space<vmem>>, %arg8: memref<1x128xf32, #tpu.memory_space<vmem>>) attributes {dimension_semantics = [#tpu.dimension_semantics<parallel>, #tpu.dimension_semantics<arbitrary>], iteration_bounds = array<i64: 1, 1>, scalar_prefetch = 0 : i64, scratch_operands = 2 : i64, tpu.core_type = #tpu.core_type<tc>, window_params = [{transform_indices = @transform_0, window_bounds = array<i64: 32, 128>}, {transform_indices = @transform_1, window_bounds = array<i64: 32, 32>}, {transform_indices = @transform_2, window_bounds = array<i64: 32, 1>}, {transform_indices = @transform_3, window_bounds = array<i64: 1, 128>}, {transform_indices = @transform_4, window_bounds = array<i64: 1, 128>}]} {
    %c0_i32 = arith.constant 0 : i32
    %0 = arith.cmpi eq, %arg1, %c0_i32 : i32
    %1 = arith.extui %0 : i1 to i32
    %c0_i32_0 = arith.constant 0 : i32
    %2 = arith.cmpi ne, %1, %c0_i32_0 : i32
    scf.if %2 {
      %cst_18 = arith.constant -1.000000e+30 : f32
      %28 = vector.broadcast %cst_18 : f32 to vector<1x128xf32>
      %c0_19 = arith.constant 0 : index
      %c0_20 = arith.constant 0 : index
      %29 = vector.load %arg7[%c0_19, %c0_20] : memref<1x128xf32, #tpu.memory_space<vmem>>, vector<1x128xf32>
      tpu.vector_store %arg7[%c0_19, %c0_20], %28 {strides = array<i32>} : memref<1x128xf32, #tpu.memory_space<vmem>>, vector<1x128xf32>,
      %cst_21 = arith.constant 0.000000e+00 : f32
      %30 = vector.broadcast %cst_21 : f32 to vector<1x128xf32>
      %c0_22 = arith.constant 0 : index
      %c0_23 = arith.constant 0 : index
      %31 = vector.load %arg8[%c0_22, %c0_23] : memref<1x128xf32, #tpu.memory_space<vmem>>, vector<1x128xf32>
      tpu.vector_store %arg8[%c0_22, %c0_23], %30 {strides = array<i32>} : memref<1x128xf32, #tpu.memory_space<vmem>>, vector<1x128xf32>,
    } else {
    }
    %c0 = arith.constant 0 : index
    %c0_1 = arith.constant 0 : index
    %3 = vector.load %arg3[%c0, %c0_1] : memref<32x32xf32, #tpu.memory_space<vmem>>, vector<32x32xf32>
    %c0_2 = arith.constant 0 : index
    %c0_3 = arith.constant 0 : index
    %4 = vector.load %arg2[%c0_2, %c0_3] : memref<32x128xf32, #tpu.memory_space<vmem>>, vector<32x128xf32>
    %cst = arith.constant dense<0.000000e+00> : vector<32x128xf32>
    %5 = tpu.matmul %3, %4, %cst {dimension_numbers = #tpu.dot_dimension_numbers<[1], [0], [0], [1], [0, 0, 1, 1], [], []>} : vector<32x32xf32>, vector<32x128xf32>, vector<32x128xf32> -> vector<32x128xf32>
    %c0_4 = arith.constant 0 : index
    %c0_5 = arith.constant 0 : index
    %6 = vector.load %arg4[%c0_4, %c0_5] : memref<32x1xf32, #tpu.memory_space<vmem>>, vector<32x1xf32>
    %7 = vector.broadcast %6 : vector<32x1xf32> to vector<32x128xf32>
    %8 = arith.addf %5, %7 : vector<32x128xf32>
    %c0_6 = arith.constant 0 : index
    %c0_7 = arith.constant 0 : index
    %9 = vector.load %arg7[%c0_6, %c0_7] : memref<1x128xf32, #tpu.memory_space<vmem>>, vector<1x128xf32>
    %cst_8 = arith.constant dense<0xFF800000> : vector<128xf32>
    %10 = vector.multi_reduction <maximumf>, %8, %cst_8 [0] : vector<32x128xf32> to vector<128xf32>
    %11 = vector.shape_cast %10 : vector<128xf32> to vector<1x128xf32>
    %12 = arith.maximumf %9, %11 : vector<1x128xf32>
    %13 = arith.subf %9, %12 : vector<1x128xf32>
    %14 = math.exp %13 : vector<1x128xf32>
    %c0_9 = arith.constant 0 : index
    %c0_10 = arith.constant 0 : index
    %15 = vector.load %arg8[%c0_9, %c0_10] : memref<1x128xf32, #tpu.memory_space<vmem>>, vector<1x128xf32>
    %16 = arith.mulf %14, %15 : vector<1x128xf32>
    %17 = vector.broadcast %12 : vector<1x128xf32> to vector<32x128xf32>
    %18 = arith.subf %8, %17 : vector<32x128xf32>
    %19 = math.exp %18 : vector<32x128xf32>
    %cst_11 = arith.constant dense<0.000000e+00> : vector<128xf32>
    %20 = vector.multi_reduction <add>, %19, %cst_11 [0] : vector<32x128xf32> to vector<128xf32>
    %21 = vector.shape_cast %20 : vector<128xf32> to vector<1x128xf32>
    %22 = arith.addf %16, %21 : vector<1x128xf32>
    %c0_12 = arith.constant 0 : index
    %c0_13 = arith.constant 0 : index
    %23 = vector.load %arg8[%c0_12, %c0_13] : memref<1x128xf32, #tpu.memory_space<vmem>>, vector<1x128xf32>
    tpu.vector_store %arg8[%c0_12, %c0_13], %22 {strides = array<i32>} : memref<1x128xf32, #tpu.memory_space<vmem>>, vector<1x128xf32>,
    %c0_14 = arith.constant 0 : index
    %c0_15 = arith.constant 0 : index
    %24 = vector.load %arg7[%c0_14, %c0_15] : memref<1x128xf32, #tpu.memory_space<vmem>>, vector<1x128xf32>
    tpu.vector_store %arg7[%c0_14, %c0_15], %12 {strides = array<i32>} : memref<1x128xf32, #tpu.memory_space<vmem>>, vector<1x128xf32>,
    %c0_i32_16 = arith.constant 0 : i32
    %25 = arith.cmpi eq, %arg1, %c0_i32_16 : i32
    %26 = arith.extui %25 : i1 to i32
    %c0_i32_17 = arith.constant 0 : i32
    %27 = arith.cmpi ne, %26, %c0_i32_17 : i32
    scf.if %27 {
      %c0_18 = arith.constant 0 : index
      %c0_19 = arith.constant 0 : index
      %28 = vector.load %arg7[%c0_18, %c0_19] : memref<1x128xf32, #tpu.memory_space<vmem>>, vector<1x128xf32>
      %c0_20 = arith.constant 0 : index
      %c0_21 = arith.constant 0 : index
      %29 = vector.load %arg8[%c0_20, %c0_21] : memref<1x128xf32, #tpu.memory_space<vmem>>, vector<1x128xf32>
      %30 = math.log %29 : vector<1x128xf32>
      %31 = arith.addf %28, %30 : vector<1x128xf32>
      %c0_22 = arith.constant 0 : index
      %c0_23 = arith.constant 0 : index
      %32 = vector.load %arg5[%c0_22, %c0_23] : memref<1x128xf32, #tpu.memory_space<vmem>>, vector<1x128xf32>
      %33 = arith.subf %31, %32 : vector<1x128xf32>
      %cst_24 = arith.constant 0.288539022 : f32
      %34 = vector.broadcast %cst_24 : f32 to vector<1x128xf32>
      %35 = arith.mulf %33, %34 : vector<1x128xf32>
      %c0_25 = arith.constant 0 : index
      %c0_26 = arith.constant 0 : index
      %36 = vector.load %arg6[%c0_25, %c0_26] : memref<1x128xf32, #tpu.memory_space<vmem>>, vector<1x128xf32>
      tpu.vector_store %arg6[%c0_25, %c0_26], %35 {strides = array<i32>} : memref<1x128xf32, #tpu.memory_space<vmem>>, vector<1x128xf32>,
    } else {
    }
    return
  }
  func.func @transform_0(%arg0: i32, %arg1: i32) -> (i32, i32) {
    %c0_i32 = arith.constant 0 : i32
    %c0_i32_0 = arith.constant 0 : i32
    return %c0_i32, %arg0 : i32, i32
  }
  func.func @transform_1(%arg0: i32, %arg1: i32) -> (i32, i32) {
    %c0_i32 = arith.constant 0 : i32
    %c0_i32_0 = arith.constant 0 : i32
    return %arg1, %c0_i32 : i32, i32
  }
  func.func @transform_2(%arg0: i32, %arg1: i32) -> (i32, i32) {
    %c0_i32 = arith.constant 0 : i32
    %c0_i32_0 = arith.constant 0 : i32
    return %arg1, %c0_i32 : i32, i32
  }
  func.func @transform_3(%arg0: i32, %arg1: i32) -> (i32, i32) {
    %c0_i32 = arith.constant 0 : i32
    %c0_i32_0 = arith.constant 0 : i32
    return %c0_i32, %arg0 : i32, i32
  }
  func.func @transform_4(%arg0: i32, %arg1: i32) -> (i32, i32) {
    %c0_i32 = arith.constant 0 : i32
    %c0_i32_0 = arith.constant 0 : i32
    return %c0_i32, %arg0 : i32, i32
  }
}

</mosaic_0001>

<bundles_post_ra>
// kernel: tpu_custom_call.1
= control target key start
LH: loop header
LB: loop body
LE: loop exit
PB: predicated region body
PF: predicated region fallthrough
CT: control target
= control target key end

     0   :  { %9 = vsyncpa [#allocation5], 0  ;;  %s405_s0 = inlined_call_operand.vmem [shape: f32[32,128], index: 0, kind: input, shape index: {}]   ;;  %s406_s1 = inlined_call_operand.hbm [shape: f32[32,32], index: 1, kind: input, shape index: {}]   ;;  %s407_s2 = inlined_call_operand.vmem [shape: f32[32,1], index: 2, kind: input, shape index: {}]   ;;  %s408_s3 = inlined_call_operand.vmem [shape: f32[1,128], index: 3, kind: input, shape index: {}]   ;;  %s409_s4 = inlined_call_operand.hbm [shape: f32[1,128], index: 4, kind: output, shape index: {}]  }
   0x1   :  { %10 = vsyncpa [#allocation6], 0  ;;  %s340_s15 = smov [#allocation4]  }
   0x2   :  { %s18_s16 = sshll.u32 %s340_s15, 4  ;;  %s19_s16 = int_to_ptr.vmem [resolvable:$true] %s18_s16 }
   0x3   :  { %s304_s17 = scalar_lea.vmem %s19_s16, 512  ;;  %p309_p1 = scmp.lt.s32.totalorder %s19_s16, %s19_s16 }
   0x4   :  { %p305_p0 = scmp.ne.s32.totalorder %s19_s16, %s304_s17  ;;  %p310_p2 = scmp.lt.s32.totalorder %s304_s17, %s304_s17 }
   0x6   :  { %p311_p3 = por %p310_p2, %p309_p1 }
   0x8   :  { %p312_p4 = pnand %p311_p3, %p305_p0 }
   0xa   :  { %315 = shalt.err (!%p312_p4)
}
   0xb   :  { %s341_s18 = smov 128   ;;  %s342_s19 = smov 8  }
   0xc   :  { %24 = dma.hbm_to_vmem [thread:$0]  %s406_s1, 512, %s19_s16, [#allocation5], %s341_s18, %s341_s18, %s342_s19  }
   0xd   :  { %336 = dma.done.wait [#allocation5], 512  }
   0xe   :  { %337 = vsyncadd [#allocation5], 4294966784  ;;  %v343_v0 = vmov 0   ;;  %v45_v1 = vld [vmem:[%s405_s0 + $0x18] sm:$0xff]  ;;  %v44_v2 = vld [vmem:[%s405_s0 + $0x10] sm:$0xff]  ;;  %vm70_vm0 = vcmask 261120   ;;  %v185_v32 = vlaneseq }
   0xf   :  { %283 = vset.pattern.permute.xlu1 %v343_v0  ;;  %282 = vset.pattern.permute.xlu0 %v343_v0  ;;  %v43_v3 = vld [vmem:[%s405_s0 + $0x8] sm:$0xff]  ;;  %v42_v4 = vld [vmem:[%s405_s0] sm:$0xff]  ;;  %v40_v6 = vld [vmem:[#allocation4 + $0x10] sm:$0xff]  ;;  %v344_v13 = vmov -1e+30   ;;  %v345_v14 = vmov 0.0  }
  0x10   :  { %253 = vmatprep.subr.mxu0 %v45_v1  ;;  %267 = vmatprep.subr.mxu1 %v45_v1  ;;  %v38_v5 = vld [vmem:[#allocation4] sm:$0xff]  ;;  %v39_v7 = vld [vmem:[#allocation4 + $0x8] sm:$0xff]  ;;  %v41_v8 = vld [vmem:[#allocation4 + $0x18] sm:$0xff]  ;;  %36 = vst [vmem:[#allocation2] sm:$0x1] %v344_v13  ;;  %v186_v35 = vshrl.u32 %v185_v32, 7 }
  0x11   :  { %254 = vmatpush3.msra.mxu0 %v45_v1  ;;  %271 = vmatpush3.msra.mxu1 %v45_v1  ;;  %v48_v9 = vld [vmem:[%s407_s2 + $0x10] sm:$0xff]  ;;  %v46_v10 = vld [vmem:[%s407_s2] sm:$0xff]  ;;  %v49_v11 = vld [vmem:[%s407_s2 + $0x18] sm:$0xff]  ;;  %37 = vst [vmem:[#allocation3] sm:$0x1] %v345_v14  ;;  %s346_s11 = smov [#allocation7]  }
  0x12   :  { %255 = vmatprep.subr.mxu0 %v44_v2  ;;  %268 = vmatprep.subr.mxu1 %v44_v2  ;;  %v47_v12 = vld [vmem:[%s407_s2 + $0x8] sm:$0xff]  ;;  %v187_v39 = vsub.s32 0, %v186_v35  ;;  %s232_s12 = sshll.u32 %s346_s11, 4  ;;  %s233_s12 = int_to_ptr.vmem [resolvable:$true] %s232_s12 }
  0x13   :  { %256 = vmatpush3.msra.mxu0 %v44_v2  ;;  %272 = vmatpush3.msra.mxu1 %v44_v2  ;;  %s316_s13 = scalar_lea.vmem %s233_s12, 16  ;;  %s320_s14 = scalar_lea.vmem %s233_s12, 32 }
  0x14   :  { %257 = vmatprep.subr.mxu0 %v43_v3  ;;  %269 = vmatprep.subr.mxu1 %v43_v3  ;;  %p317_p5 = scmp.ne.s32.totalorder %s233_s12, %s316_s13  ;;  %p321_p6 = scmp.lt.s32.totalorder %s233_s12, %s233_s12 }
  0x15   :  { %258 = vmatpush3.msra.mxu0 %v43_v3  ;;  %273 = vmatpush3.msra.mxu1 %v43_v3  ;;  %p322_p7 = scmp.lt.s32.totalorder %s320_s14, %s316_s13 }
  0x16   :  { %259 = vmatprep.subr.mxu0 %v42_v4  ;;  %270 = vmatprep.subr.mxu1 %v42_v4 }
  0x17   :  { %260 = vmatpush3.msra.mxu0 %v42_v4  ;;  %274 = vmatpush3.msra.mxu1 %v42_v4  ;;  %v168_v37 = vld [vmem:[#allocation2] sm:$0x1]  ;;  %p323_p8 = por %p322_p7, %p321_p6 }
  0x18   :  { %261 = vmatprep.mubr.msk.f32.mxu0 %vm70_vm0, %v38_v5  ;;  %264 = vmatprep.mubr.msk.f32.mxu1 %vm70_vm0, %v40_v6  ;;  %v182_v0 = vld [vmem:[#allocation3] sm:$0x1] }
  0x19   :  { %262 = vmatmul.mubr.msk.f32.vlgmr.msra.gmra.mxu0 %vm70_vm0, %v39_v7  ;;  %265 = vmatmul.mubr.msk.f32.vlgmr.msra.gmra.mxu1 %vm70_vm0, %v41_v8  ;;  %p324_p9 = pnand %p323_p8, %p317_p5 }
  0x1a   :  { %62 = vperm.xlu1 %283, %v48_v9   ;;  %52 = vperm.xlu0 %282, %v46_v10   ;;  %v222_v9 = vld [vmem:[%s408_s3] sm:$0x1] }
  0x1e   :  { %67 = vperm.xlu1 %283, %v49_v11   ;;  %57 = vperm.xlu0 %282, %v47_v12  }
  0x95   :  { %v63_v15 = vpop.permute.xlu1 %62  ;;  %v53_v16 = vpop.permute.xlu0 %52 }
  0x99   :  { %v68_v19 = vpop.permute.xlu1 %67  ;;  %v58_v20 = vpop.permute.xlu0 %57 }
  0xd9   :  { %v263_v17 = vpop.f32.mrf.mxu0  ;;  %v266_v18 = vpop.f32.mrf.mxu1 }
  0xda   :  { %v155_v23 = vadd.f32 %v263_v17, %v58_v20  ;;  %v165_v24 = vadd.f32 %v266_v18, %v68_v19 }
  0xdb   :  { %v149_v21 = vpop.f32.mrf.mxu0  ;;  %v159_v22 = vpop.f32.mrf.mxu1 }
  0xdc   :  { %v150_v25 = vadd.f32 %v149_v21, %v53_v16  ;;  %v160_v26 = vadd.f32 %v159_v22, %v63_v15 }
  0xde   :  { %v169_v27 = vmax.f32 %v150_v25, %v155_v23  ;;  %v170_v28 = vmax.f32 %v160_v26, %v165_v24 }
  0xe0   :  { %v171_v29 = vmax.f32 %v169_v27, %v170_v28 }
  0xe2   :  { %v172_v30 = vrot.slane %v171_v29, 4 }
  0xe4   :  { %v173_v31 = vmax.f32 %v171_v29, %v172_v30 }
  0xe6   :  { %v174_v33 = vrot.slane %v173_v31, 2 }
  0xe8   :  { %v175_v34 = vmax.f32 %v173_v31, %v174_v33 }
  0xea   :  { %v176_v36 = vrot.slane %v175_v34, 1 }
  0xec   :  { %v177_v38 = vmax.f32 %v175_v34, %v176_v36 }
  0xee   :  { %v178_v40 = vmax.f32 %v168_v37, %v177_v38 }
  0xf0   :  { %v188_v41 = vrot.slane %v178_v40, %v187_v39  ;;  %213 = vst [vmem:[#allocation2] sm:$0x1] %v178_v40  ;;  %v179_v50 = vsub.f32 %v168_v37, %v178_v40 }
  0xf2   :  { %v190_v42 = vsub.f32 %v150_v25, %v188_v41  ;;  %v191_v43 = vsub.f32 %v155_v23, %v188_v41  ;;  %v192_v44 = vsub.f32 %v160_v26, %v188_v41  ;;  %v193_v45 = vsub.f32 %v165_v24, %v188_v41 }
  0xf3   :  { %v180_v51 = vmul.f32 1.442695, %v179_v50 }
  0xf4   :  { %v194_v46 = vmul.f32 1.442695, %v190_v42  ;;  %v196_v47 = vmul.f32 1.442695, %v191_v43  ;;  %v198_v48 = vmul.f32 1.442695, %v192_v44 }
  0xf5   :  { %v200_v49 = vmul.f32 1.442695, %v193_v45 }
  0xf6   :  { %284 = vpow2.f32 %v194_v46 }
  0xf7   :  { %286 = vpow2.f32 %v196_v47  ;;  %v217_v8 = vld [vmem:[#allocation2] sm:$0x1] }
  0xf8   :  { %288 = vpow2.f32 %v198_v48 }
  0xf9   :  { %290 = vpow2.f32 %v200_v49 }
  0xfa   :  { %292 = vpow2.f32 %v180_v51 }
 0x103   :  { %v285_v52 = vpop.eup %284 }
 0x104   :  { %v287_v53 = vpop.eup %286 }
 0x105   :  { %v202_v54 = vadd.f32 %v287_v53, %v285_v52  ;;  %v289_v55 = vpop.eup %288 }
 0x106   :  { %v291_v57 = vpop.eup %290 }
 0x107   :  { %v203_v56 = vadd.f32 %v289_v55, %v202_v54  ;;  %v293_v63 = vpop.eup %292 }
 0x108   :  { %v183_v2 = vmul.f32 %v293_v63, %v182_v0 }
 0x109   :  { %v204_v58 = vadd.f32 %v291_v57, %v203_v56 }
 0x10b   :  { %v205_v59 = vrot.slane %v204_v58, 4 }
 0x10d   :  { %v206_v60 = vadd.f32 %v205_v59, %v204_v58 }
 0x10f   :  { %v207_v61 = vrot.slane %v206_v60, 2 }
 0x111   :  { %v208_v62 = vadd.f32 %v207_v61, %v206_v60 }
 0x113   :  { %v209_v1 = vrot.slane %v208_v62, 1 }
 0x115   :  { %v210_v3 = vadd.f32 %v209_v1, %v208_v62 }
 0x117   :  { %v211_v4 = vadd.f32 %v210_v3, %v183_v2 }
 0x119   :  { %212 = vst [vmem:[#allocation3] sm:$0x1] %v211_v4 }
 0x120   :  { %v218_v5 = vld [vmem:[#allocation3] sm:$0x1] }
 0x121   :  { %294 = vlog2.f32 %v218_v5 }
 0x12e   :  { %v295_v6 = vpop.eup %294 }
 0x12f   :  { %v220_v7 = vmul.f32 0.6931472, %v295_v6 }
 0x131   :  { %v221_v10 = vadd.f32 %v220_v7, %v217_v8 }
 0x133   :  { %v223_v11 = vsub.f32 %v221_v10, %v222_v9 }
 0x135   :  { %v224_v12 = vmul.f32 0.28853902, %v223_v11 }
 0x137   :  { %225 = vst [vmem:[#allocation7] sm:$0x1] %v224_v12 }
 0x138   :  { %327 = shalt.err (!%p324_p9)
}
 0x139   :  { %235 = dma.vmem_to_hbm [thread:$0]  %s233_s12, 16, %s409_s4, [#allocation6]  }
 0x13a   :  { %338 = dma.done.wait [#allocation6], 16  }
 0x13b   :  { %339 = vsyncadd [#allocation6], 4294967280 }
 0x13c   :  { %239 = vsyncpa [#allocation5], 1 }
 0x13d   :  { %240 = vsyncpa [#allocation6], 1 }

</bundles_post_ra>
